<compile_context>
chip_gen: v6e
topology: v6e:2x2x1
jax: 0.10.0
libtpu: 0.0.40
codegen_flags: <defaults>
</compile_context>

<pallas_src>
import functools

import jax
import jax.numpy as jnp
import numpy as np
from jax.experimental import pallas as pl
from jax.experimental.pallas import tpu as pltpu

# Module hyper-parameters (defaults of Convolution_Block)
INPUT_DIM = 40
CNN_OUT = 64
COUT_P = 128          # conv2 output channels zero-padded to a full lane tile
K1, PAD1, S1 = 3, 3, 1
K2, PAD2, S2 = 5, 0, 2
BN_EPS = 1e-5


def _round_up(x, m):
    return (x + m - 1) // m * m


def _conv_block_kernel(a1_ref, w1_ref, sh1_ref, w2_ref, sh2_ref, o_ref,
                       *, B, R1p, ne_p, L2p):
    """One batch tile (B elements) per grid step.

    a1_ref : (B, R1p, K1*Cin)   bf16  conv1 im2col rows, per-batch layout
                                      [even-phase rows (ne_p) ; odd-phase rows (no_p)]
    w1_ref : (K1*Cin, Cout)     bf16  conv1 weights, BN scale folded in
    sh1_ref: (1, Cout)          f32   conv1 BN shift (conv bias folded in)
    w2_ref : (K2, Cout, COUT_P) bf16  conv2 tap weights, BN scale folded, cols 64..127 zero
    sh2_ref: (1, COUT_P)        f32   conv2 BN shift (conv bias folded, pad cols zero)
    o_ref  : (B*L2p, COUT_P)    f32   lane-dense (128-wide) output slab
    """
    # ---- Conv1 + BN + ReLU: one MXU matmul over all (even+odd) rows ----
    a1 = a1_ref[...].reshape(B * R1p, K1 * INPUT_DIM)
    h = jnp.dot(a1, w1_ref[...], preferred_element_type=jnp.float32)
    h = jnp.maximum(h + sh1_ref[...], 0.0)
    h = h.astype(jnp.bfloat16).reshape(B, R1p, CNN_OUT)
    he = h[:, :ne_p, :]        # even-phase conv1 rows: h[0], h[2], ...
    ho = h[:, ne_p:, :]        # odd-phase  conv1 rows: h[1], h[3], ...

    # ---- Conv2 (k=5, s=2) + BN + ReLU: five accumulating K=64 dots ----
    # g[j] = h[2j]w2[0] + h[2j+1]w2[1] + h[2j+2]w2[2] + h[2j+3]w2[3] + h[2j+4]w2[4]
    w2 = w2_ref[...]

    def tap(src, j0, k):
        lhs = src[:, j0:j0 + L2p, :].reshape(B * L2p, CNN_OUT)
        return jnp.dot(lhs, w2[k], preferred_element_type=jnp.float32)

    g = tap(he, 0, 0) + tap(ho, 0, 1) + tap(he, 1, 2) + tap(ho, 1, 3) + tap(he, 2, 4)
    g = jnp.maximum(g + sh2_ref[...], 0.0)
    # Full-width (128-lane) store: no masked vst; wrapper drops pad channels/rows.
    o_ref[...] = g.astype(o_ref.dtype)


def convolution_block_forward(x_ncl, params, *, b_tile=8):
    """x_ncl: (N, INPUT_DIM, L) like PyTorch. Returns (N, CNN_OUT, L2), f32."""
    N, C_in, L = x_ncl.shape
    assert C_in == INPUT_DIM
    L1 = (L + 2 * PAD1 - K1) // S1 + 1
    L2 = (L1 - K2) // S2 + 1
    assert L2 >= 1

    ne, no = L2 + 2, L2 + 1            # conv1 rows consumed by conv2 (even / odd phase)
    L2p = _round_up(L2, 8)             # padded conv2 rows (sublane-aligned)
    ne_p = no_p = L2p + 8              # padded phase lengths (>= ne/no, multiples of 8)
    R1p = ne_p + no_p                  # multiple of 16 -> bf16-tile-aligned reshapes

    b_tile = _round_up(max(1, b_tile), 8)
    # Keep >= 2 grid steps when N allows (v7x has 2 TensorCores on the parallel axis).
    B = min(b_tile, _round_up(pl.cdiv(N, 2), 8))
    nb = pl.cdiv(N, B)
    n_pad = nb * B

    # ---- XLA-side glue (fuses): NCL->NLC, zero pad, conv1 im2col, phase split ----
    x = jnp.transpose(x_ncl, (0, 2, 1)).astype(jnp.float32)            # (N, L, Cin)
    if n_pad != N:
        x = jnp.pad(x, ((0, n_pad - N), (0, 0), (0, 0)))
    x_pad = jnp.pad(x, ((0, 0), (PAD1, PAD1), (0, 0)))                 # (n_pad, L+6, Cin)
    a_full = jnp.concatenate([x_pad[:, k:k + L1, :] for k in range(K1)], axis=-1)
    a_even = jnp.pad(a_full[:, 0::2, :][:, :ne, :], ((0, 0), (0, ne_p - ne), (0, 0)))
    a_odd = jnp.pad(a_full[:, 1::2, :][:, :no, :], ((0, 0), (0, no_p - no), (0, 0)))
    a1 = jnp.concatenate([a_even, a_odd], axis=1).astype(jnp.bfloat16)  # (n_pad, R1p, 120)

    # ---- Fold BN scales into weights; conv biases into the BN shifts ----
    sc1 = params["g1"] / jnp.sqrt(params["v1"] + BN_EPS)
    sh1 = params["beta1"] + (params["b1"] - params["m1"]) * sc1
    sc2 = params["g2"] / jnp.sqrt(params["v2"] + BN_EPS)
    sh2 = params["beta2"] + (params["b2"] - params["m2"]) * sc2
    w1 = (jnp.transpose(params["w1"], (2, 1, 0)).reshape(K1 * INPUT_DIM, CNN_OUT)
          * sc1[None, :]).astype(jnp.bfloat16)                          # (120, 64)
    w2 = (jnp.transpose(params["w2"], (2, 1, 0)) * sc2[None, None, :])  # (5, 64, 64)
    w2 = jnp.pad(w2, ((0, 0), (0, 0), (0, COUT_P - CNN_OUT))).astype(jnp.bfloat16)
    sh1 = sh1.reshape(1, CNN_OUT).astype(jnp.float32)
    sh2 = jnp.pad(sh2.reshape(1, CNN_OUT),
                  ((0, 0), (0, COUT_P - CNN_OUT))).astype(jnp.float32)

    flops = 2 * n_pad * ((2 * L2 + 3) * K1 * INPUT_DIM * CNN_OUT
                         + L2 * K2 * CNN_OUT * CNN_OUT)
    bytes_accessed = (2 * (a1.size + w1.size + w2.size)
                      + 4 * (CNN_OUT + COUT_P + n_pad * L2p * COUT_P))

    kernel = functools.partial(_conv_block_kernel, B=B, R1p=R1p, ne_p=ne_p, L2p=L2p)
    full2 = lambda n: (0, 0)

    out = pl.pallas_call(
        kernel,
        out_shape=jax.ShapeDtypeStruct((n_pad * L2p, COUT_P), jnp.float32),
        grid_spec=pltpu.PrefetchScalarGridSpec(
            num_scalar_prefetch=0,
            grid=(nb,),
            in_specs=[
                pl.BlockSpec((B, R1p, K1 * INPUT_DIM), lambda n: (n, 0, 0)),  # a1
                pl.BlockSpec((K1 * INPUT_DIM, CNN_OUT), full2),               # w1
                pl.BlockSpec((1, CNN_OUT), full2),                            # sh1
                pl.BlockSpec((K2, CNN_OUT, COUT_P), lambda n: (0, 0, 0)),     # w2
                pl.BlockSpec((1, COUT_P), full2),                             # sh2
            ],
            out_specs=pl.BlockSpec((B * L2p, COUT_P), lambda n: (n, 0)),
        ),
        compiler_params=pltpu.CompilerParams(
            dimension_semantics=("parallel",),
            vmem_limit_bytes=48 * 1024 * 1024),
        cost_estimate=pl.CostEstimate(flops=int(flops), transcendentals=0,
                                      bytes_accessed=int(bytes_accessed)),
    )(a1, w1, sh1, w2, sh2)

    # Undo the packing/padding in XLA: (n_pad*L2p, 128) -> (N, Cout, L2)
    out = out.reshape(n_pad, L2p, COUT_P)[:N, :L2, :CNN_OUT]
    return jnp.transpose(out, (0, 2, 1))


def reference_forward(x_ncl, params):
    """Plain-JAX f32 reference of the same eval-mode semantics."""
    x = jnp.transpose(x_ncl, (0, 2, 1)).astype(jnp.float32)
    N, L, _ = x.shape
    L1 = (L + 2 * PAD1 - K1) // S1 + 1
    L2 = (L1 - K2) // S2 + 1
    x_pad = jnp.pad(x, ((0, 0), (PAD1, PAD1), (0, 0)))
    w1 = jnp.transpose(params["w1"], (2, 1, 0))
    h = sum(x_pad[:, k:k + L1, :] @ w1[k] for k in range(K1)) + params["b1"]
    h = (h - params["m1"]) / jnp.sqrt(params["v1"] + BN_EPS) * params["g1"] + params["beta1"]
    h = jnp.maximum(h, 0.0)
    w2 = jnp.transpose(params["w2"], (2, 1, 0))
    g = sum(h[:, k:k + 2 * L2 - 1:S2, :] @ w2[k] for k in range(K2)) + params["b2"]
    g = (g - params["m2"]) / jnp.sqrt(params["v2"] + BN_EPS) * params["g2"] + params["beta2"]
    g = jnp.maximum(g, 0.0)
    return jnp.transpose(g, (0, 2, 1))


if __name__ == "__main__":
    key = jax.random.PRNGKey(0)
    ks = jax.random.split(key, 13)
    N, L = 2, 16
    x = jax.random.normal(ks[0], (N, INPUT_DIM, L), jnp.float32)
    params = {
        # Conv1d weights in PyTorch layout (out_ch, in_ch, k)
        "w1": 0.1 * jax.random.normal(ks[1], (CNN_OUT, INPUT_DIM, K1), jnp.float32),
        "b1": 0.1 * jax.random.normal(ks[2], (CNN_OUT,), jnp.float32),
        "g1": 1.0 + 0.1 * jax.random.normal(ks[3], (CNN_OUT,), jnp.float32),
        "beta1": 0.1 * jax.random.normal(ks[4], (CNN_OUT,), jnp.float32),
        "m1": 0.1 * jax.random.normal(ks[5], (CNN_OUT,), jnp.float32),
        "v1": 0.5 + 0.5 * jnp.abs(jax.random.normal(ks[6], (CNN_OUT,), jnp.float32)),
        "w2": 0.1 * jax.random.normal(ks[7], (CNN_OUT, CNN_OUT, K2), jnp.float32),
        "b2": 0.1 * jax.random.normal(ks[8], (CNN_OUT,), jnp.float32),
        "g2": 1.0 + 0.1 * jax.random.normal(ks[9], (CNN_OUT,), jnp.float32),
        "beta2": 0.1 * jax.random.normal(ks[10], (CNN_OUT,), jnp.float32),
        "m2": 0.1 * jax.random.normal(ks[11], (CNN_OUT,), jnp.float32),
        "v2": 0.5 + 0.5 * jnp.abs(jax.random.normal(ks[12], (CNN_OUT,), jnp.float32)),
    }

    out = jax.block_until_ready(convolution_block_forward(x, params))
    ref = reference_forward(x, params)
    assert out.shape == ref.shape == (N, CNN_OUT, 8), (out.shape, ref.shape)
    # bf16 matmul operands (f32 accumulate) -> relaxed tolerance vs f32 reference.
    np.testing.assert_allclose(np.asarray(out), np.asarray(ref), rtol=5e-2, atol=5e-2)
    print("KERNEL_OK")
</pallas_src>

<mosaic_0001>
module attributes {stable_mosaic.version = 11 : i64} {
  func.func @_conv_block_kernel(%arg0: i32, %arg1: memref<8x32x120xbf16, #tpu.memory_space<vmem>>, %arg2: memref<120x64xbf16, #tpu.memory_space<vmem>>, %arg3: memref<1x64xf32, #tpu.memory_space<vmem>>, %arg4: memref<5x64x128xbf16, #tpu.memory_space<vmem>>, %arg5: memref<1x128xf32, #tpu.memory_space<vmem>>, %arg6: memref<64x128xf32, #tpu.memory_space<vmem>>) attributes {dimension_semantics = [#tpu.dimension_semantics<parallel>], iteration_bounds = array<i64: 1>, scalar_prefetch = 0 : i64, scratch_operands = 0 : i64, tpu.core_type = #tpu.core_type<tc>, window_params = [{transform_indices = @transform_0, window_bounds = array<i64: 8, 32, 120>}, {pipeline_mode = #tpu.pipeline_mode<synchronous>, transform_indices = @transform_1, window_bounds = array<i64: 120, 64>}, {pipeline_mode = #tpu.pipeline_mode<synchronous>, transform_indices = @transform_2, window_bounds = array<i64: 1, 64>}, {pipeline_mode = #tpu.pipeline_mode<synchronous>, transform_indices = @transform_3, window_bounds = array<i64: 5, 64, 128>}, {pipeline_mode = #tpu.pipeline_mode<synchronous>, transform_indices = @transform_4, window_bounds = array<i64: 1, 128>}, {transform_indices = @transform_5, window_bounds = array<i64: 64, 128>}]} {
    %c0 = arith.constant 0 : index
    %c0_0 = arith.constant 0 : index
    %c0_1 = arith.constant 0 : index
    %0 = vector.load %arg1[%c0, %c0_0, %c0_1] : memref<8x32x120xbf16, #tpu.memory_space<vmem>>, vector<8x32x120xbf16>
    %1 = vector.shape_cast %0 : vector<8x32x120xbf16> to vector<256x120xbf16>
    %c0_2 = arith.constant 0 : index
    %c0_3 = arith.constant 0 : index
    %2 = vector.load %arg2[%c0_2, %c0_3] : memref<120x64xbf16, #tpu.memory_space<vmem>>, vector<120x64xbf16>
    %cst = arith.constant dense<0.000000e+00> : vector<256x64xf32>
    %3 = tpu.matmul %1, %2, %cst {dimension_numbers = #tpu.dot_dimension_numbers<[1], [0], [0], [1], [0, 0, 1, 1], [], []>} : vector<256x120xbf16>, vector<120x64xbf16>, vector<256x64xf32> -> vector<256x64xf32>
    %c0_4 = arith.constant 0 : index
    %c0_5 = arith.constant 0 : index
    %4 = vector.load %arg3[%c0_4, %c0_5] : memref<1x64xf32, #tpu.memory_space<vmem>>, vector<1x64xf32>
    %5 = vector.broadcast %4 : vector<1x64xf32> to vector<256x64xf32>
    %6 = arith.addf %3, %5 : vector<256x64xf32>
    %cst_6 = arith.constant 0.000000e+00 : f32
    %7 = vector.broadcast %cst_6 : f32 to vector<256x64xf32>
    %8 = arith.maximumf %6, %7 : vector<256x64xf32>
    %9 = arith.truncf %8 : vector<256x64xf32> to vector<256x64xbf16>
    %10 = vector.shape_cast %9 : vector<256x64xbf16> to vector<8x32x64xbf16>
    %11 = vector.extract_strided_slice %10 {offsets = [0, 0, 0], sizes = [8, 16, 64], strides = [1, 1, 1]} : vector<8x32x64xbf16> to vector<8x16x64xbf16>
    %12 = vector.extract_strided_slice %10 {offsets = [0, 16, 0], sizes = [8, 16, 64], strides = [1, 1, 1]} : vector<8x32x64xbf16> to vector<8x16x64xbf16>
    %c0_7 = arith.constant 0 : index
    %c0_8 = arith.constant 0 : index
    %c0_9 = arith.constant 0 : index
    %13 = vector.load %arg4[%c0_7, %c0_8, %c0_9] : memref<5x64x128xbf16, #tpu.memory_space<vmem>>, vector<5x64x128xbf16>
    %14 = vector.extract_strided_slice %11 {offsets = [0, 0, 0], sizes = [8, 8, 64], strides = [1, 1, 1]} : vector<8x16x64xbf16> to vector<8x8x64xbf16>
    %15 = vector.shape_cast %14 : vector<8x8x64xbf16> to vector<64x64xbf16>
    %16 = vector.extract_strided_slice %13 {offsets = [0, 0, 0], sizes = [1, 64, 128], strides = [1, 1, 1]} : vector<5x64x128xbf16> to vector<1x64x128xbf16>
    %17 = vector.shape_cast %16 : vector<1x64x128xbf16> to vector<64x128xbf16>
    %cst_10 = arith.constant dense<0.000000e+00> : vector<64x128xf32>
    %18 = tpu.matmul %15, %17, %cst_10 {dimension_numbers = #tpu.dot_dimension_numbers<[1], [0], [0], [1], [0, 0, 1, 1], [], []>} : vector<64x64xbf16>, vector<64x128xbf16>, vector<64x128xf32> -> vector<64x128xf32>
    %19 = vector.extract_strided_slice %12 {offsets = [0, 0, 0], sizes = [8, 8, 64], strides = [1, 1, 1]} : vector<8x16x64xbf16> to vector<8x8x64xbf16>
    %20 = vector.shape_cast %19 : vector<8x8x64xbf16> to vector<64x64xbf16>
    %21 = vector.extract_strided_slice %13 {offsets = [1, 0, 0], sizes = [1, 64, 128], strides = [1, 1, 1]} : vector<5x64x128xbf16> to vector<1x64x128xbf16>
    %22 = vector.shape_cast %21 : vector<1x64x128xbf16> to vector<64x128xbf16>
    %cst_11 = arith.constant dense<0.000000e+00> : vector<64x128xf32>
    %23 = tpu.matmul %20, %22, %cst_11 {dimension_numbers = #tpu.dot_dimension_numbers<[1], [0], [0], [1], [0, 0, 1, 1], [], []>} : vector<64x64xbf16>, vector<64x128xbf16>, vector<64x128xf32> -> vector<64x128xf32>
    %24 = arith.addf %18, %23 : vector<64x128xf32>
    %25 = vector.extract_strided_slice %11 {offsets = [0, 1, 0], sizes = [8, 8, 64], strides = [1, 1, 1]} : vector<8x16x64xbf16> to vector<8x8x64xbf16>
    %26 = vector.shape_cast %25 : vector<8x8x64xbf16> to vector<64x64xbf16>
    %27 = vector.extract_strided_slice %13 {offsets = [2, 0, 0], sizes = [1, 64, 128], strides = [1, 1, 1]} : vector<5x64x128xbf16> to vector<1x64x128xbf16>
    %28 = vector.shape_cast %27 : vector<1x64x128xbf16> to vector<64x128xbf16>
    %cst_12 = arith.constant dense<0.000000e+00> : vector<64x128xf32>
    %29 = tpu.matmul %26, %28, %cst_12 {dimension_numbers = #tpu.dot_dimension_numbers<[1], [0], [0], [1], [0, 0, 1, 1], [], []>} : vector<64x64xbf16>, vector<64x128xbf16>, vector<64x128xf32> -> vector<64x128xf32>
    %30 = arith.addf %24, %29 : vector<64x128xf32>
    %31 = vector.extract_strided_slice %12 {offsets = [0, 1, 0], sizes = [8, 8, 64], strides = [1, 1, 1]} : vector<8x16x64xbf16> to vector<8x8x64xbf16>
    %32 = vector.shape_cast %31 : vector<8x8x64xbf16> to vector<64x64xbf16>
    %33 = vector.extract_strided_slice %13 {offsets = [3, 0, 0], sizes = [1, 64, 128], strides = [1, 1, 1]} : vector<5x64x128xbf16> to vector<1x64x128xbf16>
    %34 = vector.shape_cast %33 : vector<1x64x128xbf16> to vector<64x128xbf16>
    %cst_13 = arith.constant dense<0.000000e+00> : vector<64x128xf32>
    %35 = tpu.matmul %32, %34, %cst_13 {dimension_numbers = #tpu.dot_dimension_numbers<[1], [0], [0], [1], [0, 0, 1, 1], [], []>} : vector<64x64xbf16>, vector<64x128xbf16>, vector<64x128xf32> -> vector<64x128xf32>
    %36 = arith.addf %30, %35 : vector<64x128xf32>
    %37 = vector.extract_strided_slice %11 {offsets = [0, 2, 0], sizes = [8, 8, 64], strides = [1, 1, 1]} : vector<8x16x64xbf16> to vector<8x8x64xbf16>
    %38 = vector.shape_cast %37 : vector<8x8x64xbf16> to vector<64x64xbf16>
    %39 = vector.extract_strided_slice %13 {offsets = [4, 0, 0], sizes = [1, 64, 128], strides = [1, 1, 1]} : vector<5x64x128xbf16> to vector<1x64x128xbf16>
    %40 = vector.shape_cast %39 : vector<1x64x128xbf16> to vector<64x128xbf16>
    %cst_14 = arith.constant dense<0.000000e+00> : vector<64x128xf32>
    %41 = tpu.matmul %38, %40, %cst_14 {dimension_numbers = #tpu.dot_dimension_numbers<[1], [0], [0], [1], [0, 0, 1, 1], [], []>} : vector<64x64xbf16>, vector<64x128xbf16>, vector<64x128xf32> -> vector<64x128xf32>
    %42 = arith.addf %36, %41 : vector<64x128xf32>
    %c0_15 = arith.constant 0 : index
    %c0_16 = arith.constant 0 : index
    %43 = vector.load %arg5[%c0_15, %c0_16] : memref<1x128xf32, #tpu.memory_space<vmem>>, vector<1x128xf32>
    %44 = vector.broadcast %43 : vector<1x128xf32> to vector<64x128xf32>
    %45 = arith.addf %42, %44 : vector<64x128xf32>
    %cst_17 = arith.constant 0.000000e+00 : f32
    %46 = vector.broadcast %cst_17 : f32 to vector<64x128xf32>
    %47 = arith.maximumf %45, %46 : vector<64x128xf32>
    %c0_18 = arith.constant 0 : index
    %c0_19 = arith.constant 0 : index
    %48 = vector.load %arg6[%c0_18, %c0_19] : memref<64x128xf32, #tpu.memory_space<vmem>>, vector<64x128xf32>
    tpu.vector_store %arg6[%c0_18, %c0_19], %47 {strides = array<i32>} : memref<64x128xf32, #tpu.memory_space<vmem>>, vector<64x128xf32>,
    return
  }
  func.func @transform_0(%arg0: i32) -> (i32, i32, i32) {
    %c0_i32 = arith.constant 0 : i32
    %c0_i32_0 = arith.constant 0 : i32
    %c0_i32_1 = arith.constant 0 : i32
    return %arg0, %c0_i32, %c0_i32_0 : i32, i32, i32
  }
  func.func @transform_1(%arg0: i32) -> (i32, i32) {
    %c0_i32 = arith.constant 0 : i32
    %c0_i32_0 = arith.constant 0 : i32
    %c0_i32_1 = arith.constant 0 : i32
    return %c0_i32, %c0_i32_0 : i32, i32
  }
  func.func @transform_2(%arg0: i32) -> (i32, i32) {
    %c0_i32 = arith.constant 0 : i32
    %c0_i32_0 = arith.constant 0 : i32
    %c0_i32_1 = arith.constant 0 : i32
    return %c0_i32, %c0_i32_0 : i32, i32
  }
  func.func @transform_3(%arg0: i32) -> (i32, i32, i32) {
    %c0_i32 = arith.constant 0 : i32
    %c0_i32_0 = arith.constant 0 : i32
    %c0_i32_1 = arith.constant 0 : i32
    %c0_i32_2 = arith.constant 0 : i32
    return %c0_i32, %c0_i32_0, %c0_i32_1 : i32, i32, i32
  }
  func.func @transform_4(%arg0: i32) -> (i32, i32) {
    %c0_i32 = arith.constant 0 : i32
    %c0_i32_0 = arith.constant 0 : i32
    %c0_i32_1 = arith.constant 0 : i32
    return %c0_i32, %c0_i32_0 : i32, i32
  }
  func.func @transform_5(%arg0: i32) -> (i32, i32) {
    %c0_i32 = arith.constant 0 : i32
    %c0_i32_0 = arith.constant 0 : i32
    return %arg0, %c0_i32 : i32, i32
  }
}

</mosaic_0001>

<bundles_post_ra>
// kernel: tpu_custom_call.1
= control target key start
LH: loop header
LB: loop body
LE: loop exit
PB: predicated region body
PF: predicated region fallthrough
CT: control target
= control target key end

     0   :  { %10 = vsyncpa [#allocation3], 0  ;;  %s2395_s0 = inlined_call_operand.hbm [shape: bf16[8,32,120], index: 0, kind: input, shape index: {}]   ;;  %s2396_s1 = inlined_call_operand.vmem [shape: bf16[120,64], index: 1, kind: input, shape index: {}]   ;;  %s2397_s2 = inlined_call_operand.vmem [shape: f32[1,64], index: 2, kind: input, shape index: {}]   ;;  %s2398_s3 = inlined_call_operand.hbm [shape: bf16[5,64,128], index: 3, kind: input, shape index: {}]   ;;  %s2399_s4 = inlined_call_operand.vmem [shape: f32[1,128], index: 4, kind: input, shape index: {}]   ;;  %s2400_s5 = inlined_call_operand.hbm [shape: f32[64,128], index: 5, kind: output, shape index: {}]  }
   0x1   :  { %11 = vsyncpa [#allocation6], 0 }
   0x2   :  { %12 = vsyncpa [#allocation4], 0  ;;  %s1988_s18 = smov [#allocation2]  }
   0x3   :  { %s18_s19 = sshll.u32 %s1988_s18, 4  ;;  %s19_s19 = int_to_ptr.vmem [resolvable:$true] %s18_s19 }
   0x4   :  { %s1930_s20 = scalar_lea.vmem %s19_s19, 2048  ;;  %p1935_p1 = scmp.lt.s32.totalorder %s19_s19, %s19_s19 }
   0x5   :  { %p1931_p0 = scmp.ne.s32.totalorder %s19_s19, %s1930_s20  ;;  %p1936_p2 = scmp.lt.s32.totalorder %s1930_s20, %s1930_s20 }
   0x7   :  { %p1937_p3 = por %p1936_p2, %p1935_p1 }
   0x9   :  { %p1938_p4 = pnand %p1937_p3, %p1931_p0 }
   0xb   :  { %1941 = shalt.err (!%p1938_p4)
}
   0xc   :  { %s1989_s21 = smov 64   ;;  %s1990_s22 = smov 4  }
   0xd   :  { %24 = dma.hbm_to_vmem [thread:$0]  %s2395_s0, 2048, %s19_s19, [#allocation3], %s1989_s21, %s1989_s21, %s1990_s22  }
   0xe   :  { %s1991_s25 = smov [#allocation5]  }
   0xf   :  { %s34_s26 = sshll.u32 %s1991_s25, 4  ;;  %s35_s26 = int_to_ptr.vmem [resolvable:$true] %s34_s26 }
  0x10   :  { %s1950_s27 = scalar_lea.vmem %s35_s26, 2560  ;;  %p1955_p6 = scmp.lt.s32.totalorder %s35_s26, %s35_s26 }
  0x11   :  { %p1951_p5 = scmp.ne.s32.totalorder %s35_s26, %s1950_s27  ;;  %p1956_p7 = scmp.lt.s32.totalorder %s1950_s27, %s1950_s27 }
  0x13   :  { %p1957_p8 = por %p1956_p7, %p1955_p6 }
  0x15   :  { %p1958_p9 = pnand %p1957_p8, %p1951_p5 }
  0x17   :  { %1961 = shalt.err (!%p1958_p9)
}
  0x18   :  { %40 = dma.hbm_to_vmem [thread:$0]  %s2398_s3, 2560, %s35_s26, [#allocation6], %s1989_s21, %s1989_s21, %s1990_s22  }
  0x19   :  { %1982 = dma.done.wait [#allocation3], 2048  }
  0x1a   :  { %1983 = vsyncadd [#allocation3], 4294965248 }
  0x1b   :  { %1984 = dma.done.wait [#allocation6], 2560  }
  0x1c   :  { %1985 = vsyncadd [#allocation6], 4294964736  ;;  %vm278_vm0 = vcmask 1043456   ;;  %v1878_v0 = vld [vmem:[%s2396_s1 + $0x38] ss:$0 sps:$4 sm:$0xff]   ;;  %v1879_v1 = vld [vmem:[%s2396_s1 + $0x30] sm:$0xff]  }
  0x1d   :  { %1870 = vmatprep.subr.msk.bf16.mxu0 %vm278_vm0, %v1878_v0  ;;  %v280_v2 = vsel %vm278_vm0, %v1878_v0, 0  ;;  %v1880_v3 = vld [vmem:[%s2396_s1 + $0x28] sm:$0xff]   ;;  %v1881_v4 = vld [vmem:[%s2396_s1 + $0x20] sm:$0xff]   ;;  %vm229_vm1 = vcmask 982016   ;;  %v1882_v6 = vld [vmem:[%s2396_s1 + $0x18] sm:$0xff]   ;;  %vm575_vm5 = vcmask 523264  }
  0x1e   :  { %1743 = vmatpush3.bf16.msra.mxu0 %v280_v2  ;;  %v1886_v5 = vld [vmem:[#allocation2] sm:$0xff]   ;;  %v1883_v7 = vld [vmem:[%s2396_s1 + $0x10] sm:$0xff]   ;;  %v1884_v8 = vld [vmem:[%s2396_s1 + $0x8] sm:$0xff]   ;;  %vm798_vm2 = vsmask.f32 3328  ;;  %vm1291_vm6 = vcmask 1042432  }
  0x1f   :  { %1744 = vmatprep.subr.bf16.mxu0 %v1879_v1  ;;  %1758 = vmatprep.mubr.msk.bf16.mxu0 %vm229_vm1, %v1886_v5  ;;  %v1885_v9 = vld [vmem:[%s2396_s1] sm:$0xff]   ;;  %v1887_v10 = vld [vmem:[#allocation2 + $0x8] sm:$0xff]   ;;  %v1888_v11 = vld [vmem:[#allocation2 + $0x10] sm:$0xff]   ;;  %vm799_vm3 = vsmask.f32 7440  ;;  %vm1292_vm7 = vcmask 1046532  }
  0x20   :  { %v1889_v12 = vld [vmem:[#allocation2 + $0x18] sm:$0xff]   ;;  %v1890_v13 = vld [vmem:[#allocation2 + $0x20] sm:$0xff]   ;;  %v1891_v14 = vld [vmem:[#allocation2 + $0x28] sm:$0xff]  }
  0x21   :  { %v1892_v15 = vld [vmem:[#allocation2 + $0x30] sm:$0xff]   ;;  %v1893_v16 = vld [vmem:[#allocation2 + $0x38] sm:$0xff]   ;;  %v1894_v17 = vld [vmem:[#allocation2 + $0x40] sm:$0xff]  }
  0x22   :  { %1745 = vmatpush3.bf16.msra.mxu0 %v1879_v1  ;;  %v1895_v18 = vld [vmem:[#allocation2 + $0x48] sm:$0xff]   ;;  %v1896_v19 = vld [vmem:[#allocation2 + $0x50] sm:$0xff]   ;;  %v1897_v20 = vld [vmem:[#allocation2 + $0x58] sm:$0xff]  }
  0x23   :  { %1746 = vmatprep.subr.bf16.mxu0 %v1880_v3  ;;  %v1898_v21 = vld [vmem:[#allocation2 + $0x60] sm:$0xff]   ;;  %v1899_v22 = vld [vmem:[#allocation2 + $0x68] sm:$0xff]   ;;  %v1900_v23 = vld [vmem:[#allocation2 + $0x70] sm:$0xff]  }
  0x24   :  { %v1901_v24 = vld [vmem:[#allocation2 + $0x78] sm:$0xff]   ;;  %v1903_v26 = vld [vmem:[#allocation5 + $0x30] sm:$0xff]   ;;  %v1904_v27 = vld [vmem:[#allocation5 + $0x28] sm:$0xff]  }
  0x25   :  { %v1902_v25 = vld [vmem:[#allocation5 + $0x38] sm:$0xff]   ;;  %v1905_v28 = vld [vmem:[#allocation5 + $0x20] sm:$0xff]   ;;  %vm2090_vm4 = vmor %vm798_vm2, %vm799_vm3 }
  0x26   :  { %1747 = vmatpush3.bf16.msra.mxu0 %v1880_v3  ;;  %1790 = vmatprep.subr.bf16.mxu1 %v1902_v25  ;;  %v2071_v29 = vld [vmem:[#allocation5 + $0x18] sm:$0xff]   ;;  %v2077_v30 = vld [vmem:[%s2397_s2] ss:$0 sm:$0xff]  ;;  %vm2347_vm8 = vmor %vm1291_vm6, %vm1292_vm7 }
  0x27   :  { %1748 = vmatprep.subr.bf16.mxu0 %v1881_v4  ;;  %1791 = vmatpush3.bf16.msra.mxu1 %v1902_v25 }
  0x28   :  { %1792 = vmatprep.subr.bf16.mxu1 %v1903_v26 }
  0x2a   :  { %1749 = vmatpush3.bf16.msra.mxu0 %v1881_v4 }
  0x2b   :  { %1750 = vmatprep.subr.bf16.mxu0 %v1882_v6  ;;  %1793 = vmatpush3.bf16.msra.mxu1 %v1903_v26 }
  0x2c   :  { %1794 = vmatprep.subr.bf16.mxu1 %v1904_v27 }
  0x2e   :  { %1751 = vmatpush3.bf16.msra.mxu0 %v1882_v6 }
  0x2f   :  { %1752 = vmatprep.subr.bf16.mxu0 %v1883_v7  ;;  %1795 = vmatpush3.bf16.msra.mxu1 %v1904_v27 }
  0x30   :  { %1796 = vmatprep.subr.bf16.mxu1 %v1905_v28 }
  0x32   :  { %1753 = vmatpush3.bf16.msra.mxu0 %v1883_v7 }
  0x33   :  { %1754 = vmatprep.subr.bf16.mxu0 %v1884_v8  ;;  %1797 = vmatpush3.bf16.msra.mxu1 %v1905_v28 }
  0x34   :  { %1806 = vmatprep.subr.bf16.mxu1 %v2071_v29 }
  0x36   :  { %1755 = vmatpush3.bf16.msra.mxu0 %v1884_v8 }
  0x37   :  { %1756 = vmatprep.subr.bf16.mxu0 %v1885_v9 }
  0x3a   :  { %1757 = vmatpush3.bf16.msra.mxu0 %v1885_v9 }
  0x3d   :  { %1759 = vmatmul.mubr.msk.bf16.vlgmr.msra.gmra.mxu0 %vm229_vm1, %v1887_v10 }
  0x3e   :  { %1762 = vmatprep.mubr.msk.bf16.mxu0 %vm229_vm1, %v1888_v11 }
  0x45   :  { %1763 = vmatmul.mubr.msk.bf16.gmra.mxu0 %vm229_vm1, %v1889_v12 }
  0x46   :  { %1766 = vmatprep.mubr.msk.bf16.mxu0 %vm229_vm1, %v1890_v13 }
  0x4d   :  { %1767 = vmatmul.mubr.msk.bf16.gmra.mxu0 %vm229_vm1, %v1891_v14 }
  0x4e   :  { %1770 = vmatprep.mubr.msk.bf16.mxu0 %vm229_vm1, %v1892_v15 }
  0x55   :  { %1771 = vmatmul.mubr.msk.bf16.gmra.mxu0 %vm229_vm1, %v1893_v16 }
  0x56   :  { %1774 = vmatprep.mubr.msk.bf16.mxu0 %vm229_vm1, %v1894_v17 }
  0x5d   :  { %1775 = vmatmul.mubr.msk.bf16.gmra.mxu0 %vm229_vm1, %v1895_v18 }
  0x5e   :  { %1778 = vmatprep.mubr.msk.bf16.mxu0 %vm229_vm1, %v1896_v19 }
  0x65   :  { %1779 = vmatmul.mubr.msk.bf16.gmra.mxu0 %vm229_vm1, %v1897_v20 }
  0x66   :  { %1782 = vmatprep.mubr.msk.bf16.mxu0 %vm229_vm1, %v1898_v21 }
  0x6d   :  { %1783 = vmatmul.mubr.msk.bf16.gmra.mxu0 %vm229_vm1, %v1899_v22 }
  0x6e   :  { %1786 = vmatprep.mubr.msk.bf16.mxu0 %vm229_vm1, %v1900_v23 }
  0x75   :  { %1787 = vmatmul.mubr.msk.bf16.gmra.mxu0 %vm229_vm1, %v1901_v24 }
  0xfd   :  { %v1760_v31 = vpop.f32.mrf.mxu0 }
  0xfe   :  { %v325_v32 = vadd.f32 %v1760_v31, %v2077_v30 }
  0xff   :  { %v2080_v33 = vpop.f32.mrf.mxu0 }
 0x100   :  { %v445_v34 = vmax.f32 %v325_v32, 0.0 }
 0x101   :  { %v1761_v35 = vpop.f32.mrf.mxu0 }
 0x102   :  { %v1662_v36 = vpack.c.bf16 %v445_v34, %v445_v34  ;;  %v328_v37 = vadd.f32 %v1761_v35, %v2077_v30 }
 0x103   :  { %v2083_v38 = vpop.f32.mrf.mxu0 }
 0x104   :  { %v1059_v39 = vshrl.u32 %v1662_v36, 16  ;;  %v1062_v40 = vshll.u32 %v1662_v36, 16  ;;  %v446_v41 = vmax.f32 %v328_v37, 0.0 }
 0x105   :  { %v1764_v42 = vpop.f32.mrf.mxu0 }
 0x106   :  { %v1061_v43 = vrot.slane %v1059_v39, 4  ;;  %v1064_v44 = vrot.slane %v1062_v40, 5  ;;  %v1663_v45 = vpack.c.bf16 %v446_v41, %v446_v41  ;;  %v341_v46 = vadd.f32 %v1764_v42, %v2077_v30  ;;  %v1907_v39 = vld [vmem:[#allocation5 + $0x10] sm:$0xff]  }
 0x107   :  { %v2086_v47 = vpop.f32.mrf.mxu0 }
 0x108   :  { %v1065_v48 = vor.u32 %v1064_v44, %v1061_v43  ;;  %v1068_v49 = vshll.u32 %v1663_v45, 16  ;;  %v449_v50 = vmax.f32 %v341_v46, 0.0 }
 0x109   :  { %v1765_v51 = vpop.f32.mrf.mxu0 }
 0x10a   :  { %v2088_v52 = vrot.slane %v1065_v48, 4  ;;  %v344_v54 = vadd.f32 %v1765_v51, %v2077_v30  ;;  %v2095_v55 = vrot.slane %v1068_v49, 5  ;;  %v1664_v56 = vpack.c.bf16 %v449_v50, %v449_v50  ;;  %v1908_v49 = vld [vmem:[#allocation5 + $0x8] sm:$0xff]  }
 0x10b   :  { %v2097_v57 = vpop.f32.mrf.mxu0  ;;  %v1638_v1 = vpack.c.bf16 %v449_v50, %v445_v34 }
 0x10c   :  { %v450_v58 = vmax.f32 %v344_v54, 0.0  ;;  %v1071_v59 = vsel %vm2090_vm4, %v2088_v52, %v2095_v55  ;;  %v1073_v60 = vshrl.u32 %v1664_v56, 16  ;;  %v1076_v62 = vshll.u32 %v1664_v56, 16 }
 0x10d   :  { %v1768_v61 = vpop.f32.mrf.mxu0  ;;  %1798 = vmatprep.mubr.msk.bf16.mxu1 %vm575_vm5, %v1638_v1 }
 0x10e   :  { %v1075_v63 = vrot.slane %v1073_v60, 4  ;;  %v1665_v0 = vpack.c.bf16 %v450_v58, %v450_v58  ;;  %v1078_v3 = vrot.slane %v1076_v62, 5  ;;  %v357_v4 = vadd.f32 %v1768_v61, %v2077_v30  ;;  %v1909_v61 = vld [vmem:[#allocation5] sm:$0xff]  }
 0x10f   :  { %v2103_v2 = vpop.f32.mrf.mxu0 }
 0x110   :  { %v1082_v5 = vshll.u32 %v1665_v0, 16  ;;  %v1079_v7 = vor.u32 %v1078_v3, %v1075_v63  ;;  %v453_v8 = vmax.f32 %v357_v4, 0.0  ;;  %v317_v3 = vadd.f32 %v2077_v30, %v2080_v33 }
 0x111   :  { %v1769_v6 = vpop.f32.mrf.mxu0 }
 0x112   :  { %v360_v9 = vadd.f32 %v1769_v6, %v2077_v30  ;;  %v2108_v10 = vrot.slane %v1082_v5, 5  ;;  %v2112_v12 = vrot.slane %v1079_v7, 4  ;;  %v1666_v13 = vpack.c.bf16 %v453_v8, %v453_v8  ;;  %v2144_v6 = vld [vmem:[#allocation5 + $0x58] sm:$0xff]  }
 0x113   :  { %v2110_v11 = vpop.f32.mrf.mxu0  ;;  %v333_v7 = vadd.f32 %v2077_v30, %v2086_v47 }
 0x114   :  { %v454_v14 = vmax.f32 %v360_v9, 0.0  ;;  %v1085_v16 = vsel %vm2090_vm4, %v2112_v12, %v2108_v10  ;;  %v1087_v17 = vshrl.u32 %v1666_v13, 16  ;;  %v1090_v18 = vshll.u32 %v1666_v13, 16 }
 0x115   :  { %v1772_v15 = vpop.f32.mrf.mxu0 }
 0x116   :  { %v1667_v19 = vpack.c.bf16 %v454_v14, %v454_v14  ;;  %v1089_v21 = vrot.slane %v1087_v17, 4  ;;  %v1092_v22 = vrot.slane %v1090_v18, 5  ;;  %v373_v24 = vadd.f32 %v1772_v15, %v2077_v30 }
 0x117   :  { %v2118_v20 = vpop.f32.mrf.mxu0  ;;  %v2152_v14 = vmax.f32 %v317_v3, 0.0  ;;  %v447_v17 = vmax.f32 %v333_v7, 0.0 }
 0x118   :  { %v1096_v23 = vshll.u32 %v1667_v19, 16  ;;  %v1093_v26 = vor.u32 %v1092_v22, %v1089_v21  ;;  %v457_v31 = vmax.f32 %v373_v24, 0.0  ;;  %v320_v21 = vadd.f32 %v2077_v30, %v2083_v38 }
 0x119   :  { %v1773_v25 = vpop.f32.mrf.mxu0  ;;  %v2160_v47 = vpack.c.bf16 %v2152_v14, %v2152_v14  ;;  %v2166_v22 = vpack.c.bf16 %v447_v17, %v447_v17  ;;  %v365_v38 = vadd.f32 %v2077_v30, %v2118_v20 }
 0x11a   :  { %v1098_v27 = vrot.slane %v1096_v23, 5  ;;  %v376_v28 = vadd.f32 %v1773_v25, %v2077_v30  ;;  %v1094_v34 = vrot.slane %v1093_v26, 4  ;;  %v1639_v36 = vpack.c.bf16 %v457_v31, %v453_v8 }
 0x11b   :  { %v2122_v32 = vpop.f32.mrf.mxu0  ;;  %v1668_v41 = vpack.c.bf16 %v457_v31, %v457_v31  ;;  %v336_v23 = vadd.f32 %v2077_v30, %v2097_v57  ;;  %v802_v24 = vshrl.u32 %v2160_v47, 16  ;;  %v805_v25 = vshll.u32 %v2160_v47, 16 }
 0x11c   :  { %v458_v35 = vmax.f32 %v376_v28, 0.0  ;;  %v1099_v40 = vsel %vm2090_vm4, %v1094_v34, %v1098_v27  ;;  %1799 = vmatmul.mubr.msk.bf16.vlgmr.msra.gmra.mxu1 %vm575_vm5, %v1639_v36  ;;  %v349_v26 = vadd.f32 %v2077_v30, %v2103_v2  ;;  %v444_v28 = vmax.f32 %v320_v21, 0.0 }
 0x11d   :  { %v1776_v37 = vpop.f32.mrf.mxu0  ;;  %v1101_v44 = vshrl.u32 %v1668_v41, 16  ;;  %v1104_v45 = vshll.u32 %v1668_v41, 16  ;;  %1807 = vmatpush3.bf16.msra.mxu1 %v2071_v29  ;;  %v816_v31 = vshrl.u32 %v2166_v22, 16  ;;  %v819_v34 = vshll.u32 %v2166_v22, 16 }
 0x11e   :  { %v1669_v42 = vpack.c.bf16 %v458_v35, %v458_v35  ;;  %1808 = vmatprep.subr.bf16.mxu1 %v1907_v39  ;;  %v389_v63 = vadd.f32 %v1776_v37, %v2077_v30  ;;  %v448_v35 = vmax.f32 %v336_v23, 0.0  ;;  %v804_v36 = vrot.slane %v802_v24, 4 }
 0x11f   :  { %v2127_v43 = vpop.f32.mrf.mxu0  ;;  %v1103_v50 = vrot.slane %v1101_v44, 4  ;;  %v1106_v51 = vrot.slane %v1104_v45, 5  ;;  %v807_v57 = vrot.slane %v805_v25, 5  ;;  %v2180_v37 = vmax.f32 %v349_v26, 0.0 }
 0x120   :  { %v1110_v46 = vshll.u32 %v1669_v42, 16  ;;  %v2148_v8 = vmax.f32 %v389_v63, 0.0  ;;  %v818_v42 = vrot.slane %v816_v31, 4  ;;  %v821_v44 = vrot.slane %v819_v34, 5 }
 0x121   :  { %v2130_v48 = vpop.f32.mrf.mxu0  ;;  %v1107_v56 = vor.u32 %v1106_v51, %v1103_v50  ;;  %1809 = vmatpush3.bf16.msra.mxu1 %v1907_v39  ;;  %v2186_v45 = vmax.f32 %v365_v38, 0.0  ;;  %v381_v20 = vadd.f32 %v2077_v30, %v2127_v43  ;;  %v808_v50 = vor.u32 %v807_v57, %v804_v36 }
 0x122   :  { %v1112_v58 = vrot.slane %v1110_v46, 5  ;;  %1810 = vmatprep.subr.bf16.mxu1 %v1908_v49  ;;  %v2188_v46 = vpack.c.bf16 %v448_v35, %v448_v35  ;;  %v2195_v51 = vpack.c.bf16 %v2180_v37, %v2180_v37 }
 0x123   :  { %v2132_v54 = vpop.f32.mrf.mxu0  ;;  %v1108_v62 = vrot.slane %v1107_v56, 4  ;;  %v352_v56 = vadd.f32 %v2077_v30, %v2110_v11  ;;  %v2206_v43 = vpack.c.bf16 %v2186_v45, %v2186_v45  ;;  %v459_v3 = vmax.f32 %v381_v20, 0.0 }
 0x124   :  { %v825_v11 = vshll.u32 %v2188_v46, 16  ;;  %v2217_v24 = vrot.slane %v808_v50, 4 }
 0x125   :  { %v1780_v60 = vpop.f32.mrf.mxu0  ;;  %v1113_v1 = vsel %vm2090_vm4, %v1108_v62, %v1112_v58  ;;  %1811 = vmatpush3.bf16.msra.mxu1 %v1908_v49  ;;  %v452_v21 = vmax.f32 %v352_v56, 0.0  ;;  %v847_v35 = vshll.u32 %v2206_v43, 16  ;;  %v2235_v36 = vpack.c.bf16 %v459_v3, %v459_v3 }
 0x126   :  { %v405_v29 = vadd.f32 %v1780_v60, %v2077_v30  ;;  %v2140_v4 = vcombine.low %v1099_v40, %v1113_v1  ;;  %1812 = vmatprep.subr.bf16.mxu1 %v1909_v61  ;;  %v2182_v40 = vpack.c.bf16 %v444_v28, %v444_v28  ;;  %v1642_v1 = vpack.c.bf16 %v447_v17, %v2152_v14 }
 0x127   :  { %v396_v0 = vpop.f32.mrf.mxu0  ;;  %v844_v28 = vshrl.u32 %v2206_v43, 16  ;;  %v2232_v38 = vrot.slane %v825_v11, 5 }
 0x128   :  { %v2150_v9 = vmax.f32 %v405_v29, 0.0  ;;  %v397_v2 = vadd.f32 %v2077_v30, %v396_v0  ;;  %v811_v58 = vshll.u32 %v2182_v40, 16  ;;  %v822_v29 = vor.u32 %v821_v44, %v818_v42 }
 0x129   :  { %v2142_v5 = vpop.f32.mrf.mxu0  ;;  %1813 = vmatpush3.bf16.msra.mxu1 %v1909_v61  ;;  %v368_v0 = vadd.f32 %v2077_v30, %v2122_v32  ;;  %v846_v50 = vrot.slane %v844_v28, 4  ;;  %v1912_v28 = vld [vmem:[#allocation5 + $0x48] sm:$0xff]  }
 0x12a   :  { %v1640_v33 = vpack.c.bf16 %v2150_v9, %v2148_v8  ;;  %1822 = vmatprep.subr.bf16.mxu1 %v2144_v6  ;;  %v463_v60 = vmax.f32 %v397_v2, 0.0  ;;  %v2219_v25 = vrot.slane %v811_v58, 5  ;;  %v2227_v26 = vrot.slane %v822_v29, 4 }
 0x12b   :  { %v399_v13 = vpop.f32.mrf.mxu0  ;;  %v456_v31 = vmax.f32 %v368_v0, 0.0  ;;  %v2239_v2 = vpack.c.bf16 %v452_v21, %v452_v21  ;;  %v1911_v0 = vld [vmem:[#allocation5 + $0x50] sm:$0xff]  }
 0x12c   :  { %1802 = vmatprep.mubr.msk.bf16.mxu1 %vm575_vm5, %v1640_v33  ;;  %v830_v33 = vshrl.u32 %v2195_v51, 16  ;;  %v2221_v32 = vpack.c.bf16 %v463_v60, %v463_v60  ;;  %v400_v14 = vadd.f32 %v2077_v30, %v399_v13  ;;  %v384_v13 = vadd.f32 %v2077_v30, %v2132_v54 }
 0x12d   :  { %v1784_v15 = vpop.f32.mrf.mxu0  ;;  %v2247_v56 = vpack.c.bf16 %v456_v31, %v456_v31  ;;  %v2259_v54 = vcombine.low %v1071_v59, %v1085_v16  ;;  %v1644_v11 = vpack.c.bf16 %v463_v60, %v459_v3  ;;  %v839_v12 = vshll.u32 %v2239_v2, 16 }
 0x12e   :  { %v421_v41 = vadd.f32 %v1784_v15, %v2077_v30  ;;  %v833_v15 = vshll.u32 %v2195_v51, 16  ;;  %v832_v57 = vrot.slane %v830_v33, 4  ;;  %v872_v42 = vshrl.u32 %v2221_v32, 16 }
 0x12f   :  { %v412_v18 = vpop.f32.mrf.mxu0  ;;  %v875_v44 = vshll.u32 %v2221_v32, 16  ;;  %v464_v20 = vmax.f32 %v400_v14, 0.0  ;;  %v460_v29 = vmax.f32 %v384_v13, 0.0  ;;  %v853_v16 = vshll.u32 %v2247_v56, 16 }
 0x130   :  { %v2200_v61 = vmax.f32 %v421_v41, 0.0  ;;  %v413_v34 = vadd.f32 %v2077_v30, %v412_v18  ;;  %v1643_v18 = vpack.c.bf16 %v2186_v45, %v2180_v37  ;;  %v849_v37 = vrot.slane %v847_v35, 5 }
 0x131   :  { %v2162_v19 = vpop.f32.mrf.mxu0  ;;  %v858_v45 = vshrl.u32 %v2235_v36, 16  ;;  %v874_v52 = vrot.slane %v872_v42, 4  ;;  %v877_v55 = vrot.slane %v875_v44, 5  ;;  %v2269_v59 = vpack.c.bf16 %v464_v20, %v464_v20 }
 0x132   :  { %v467_v58 = vmax.f32 %v413_v34, 0.0  ;;  %v814_v3 = vsel %vm2090_vm4, %v2217_v24, %v2219_v25  ;;  %v2283_v14 = vpack.c.bf16 %v460_v29, %v460_v29  ;;  %v841_v13 = vrot.slane %v839_v12, 5 }
 0x133   :  { %v2174_v27 = vpop.f32.mrf.mxu0  ;;  %v860_v21 = vrot.slane %v858_v45, 4  ;;  %v878_v24 = vor.u32 %v877_v55, %v874_v52  ;;  %v881_v25 = vshll.u32 %v2269_v59, 16  ;;  %v1672_v29 = vpack.c.bf16 %v2150_v9, %v2150_v9 }
 0x134   :  { %v2273_v33 = vpack.c.bf16 %v467_v58, %v467_v58  ;;  %v416_v60 = vadd.f32 %v2077_v30, %v2174_v27  ;;  %v1670_v52 = vpack.c.bf16 %v2148_v8, %v2148_v8  ;;  %v1312_v53 = vrot.slane %v2283_v14, 5 }
 0x135   :  { %v1788_v39 = vpop.f32.mrf.mxu0 }
 0x136   :  { %v437_v49 = vadd.f32 %v1788_v39, %v2077_v30  ;;  %v835_v39 = vrot.slane %v833_v15, 5  ;;  %v850_v15 = vor.u32 %v849_v37, %v846_v50  ;;  %v468_v42 = vmax.f32 %v416_v60, 0.0 }
 0x137   :  { %v428_v63 = vpop.f32.mrf.mxu0 }
 0x138   :  { %v2202_v62 = vmax.f32 %v437_v49, 0.0  ;;  %v429_v23 = vadd.f32 %v2077_v30, %v428_v63  ;;  %v861_v63 = vshll.u32 %v2235_v36, 16  ;;  %v851_v44 = vrot.slane %v850_v15, 4 }
 0x139   :  { %v2224_v17 = vpop.f32.mrf.mxu0  ;;  %v2305_v12 = vpack.c.bf16 %v468_v42, %v468_v42  ;;  %v1129_v15 = vshrl.u32 %v1672_v29, 16 }
 0x13a   :  { %v1641_v7 = vpack.c.bf16 %v2202_v62, %v2200_v61  ;;  %v2241_v41 = vmax.f32 %v429_v23, 0.0  ;;  %v863_v23 = vrot.slane %v861_v63, 5 }
 0x13b   :  { %v431_v49 = vpop.f32.mrf.mxu0  ;;  %v895_v8 = vshll.u32 %v2305_v12, 16 }
 0x13c   :  { %1803 = vmatmul.mubr.msk.bf16.gmra.mxu1 %vm575_vm5, %v1641_v7  ;;  %v2265_v7 = vpack.c.bf16 %v2241_v41, %v2241_v41  ;;  %v432_v10 = vadd.f32 %v2077_v30, %v431_v49  ;;  %v864_v20 = vor.u32 %v863_v23, %v860_v21  ;;  %v867_v49 = vshll.u32 %v2283_v14, 16 }
 0x13d   :  { %1814 = vmatprep.mubr.msk.bf16.mxu1 %vm575_vm5, %v1642_v1  ;;  %v836_v1 = vor.u32 %v835_v39, %v832_v57  ;;  %v855_v57 = vrot.slane %v853_v16, 5  ;;  %v886_v39 = vshrl.u32 %v2273_v33, 16  ;;  %v1645_v50 = vpack.c.bf16 %v2241_v41, %v467_v58  ;;  %v1914_v16 = vld [vmem:[#allocation5 + $0x78] sm:$0xff]  }
 0x13e   :  { %v900_v31 = vshrl.u32 %v2265_v7, 16  ;;  %v903_v27 = vshll.u32 %v2265_v7, 16  ;;  %v472_v34 = vmax.f32 %v432_v10, 0.0  ;;  %v392_v41 = vadd.f32 %v2130_v48, %v2077_v30 }
 0x13f   :  { %v837_v35 = vrot.slane %v836_v1, 4  ;;  %v879_v1 = vrot.slane %v878_v24, 4  ;;  %v888_v58 = vrot.slane %v886_v39, 4  ;;  %v856_v9 = vsel %vm2090_vm4, %v851_v44, %v855_v57 }
 0x140   :  { %v905_v37 = vrot.slane %v903_v27, 5  ;;  %v2296_v45 = vpack.c.bf16 %v472_v34, %v472_v34  ;;  %v869_v55 = vrot.slane %v867_v49, 5  ;;  %v1132_v21 = vshll.u32 %v1672_v29, 16  ;;  %v1916_v29 = vld [vmem:[#allocation5 + $0x68] sm:$0xff]  }
 0x141   :  { %v842_v48 = vsel %vm2090_vm4, %v837_v35, %v841_v13  ;;  %v462_v27 = vmax.f32 %v392_v41, 0.0  ;;  %v1118_v24 = vshll.u32 %v1670_v52, 16  ;;  %v440_v35 = vadd.f32 %v2224_v17, %v2077_v30 }
 0x142   :  { %v1676_v57 = vpack.c.bf16 %v2202_v62, %v2202_v62  ;;  %v1131_v44 = vrot.slane %v1129_v15, 4 }
 0x144   :  { %1815 = vmatmul.mubr.msk.bf16.vlgmr.msra.gmra.mxu1 %vm575_vm5, %v1643_v18  ;;  %v889_v18 = vshll.u32 %v2273_v33, 16 }
 0x145   :  { %1823 = vmatpush3.bf16.msra.mxu1 %v2144_v6  ;;  %1818 = vmatprep.mubr.msk.bf16.mxu1 %vm575_vm5, %v1644_v11  ;;  %v828_v6 = vsel %vm2090_vm4, %v2227_v26, %v2232_v38  ;;  %v1913_v26 = vld [vmem:[#allocation5 + $0x40] sm:$0xff]   ;;  %v902_v38 = vrot.slane %v900_v31, 4  ;;  %v883_v11 = vrot.slane %v881_v25, 5  ;;  %v1578_v31 = vcombine.low %v842_v48, %v856_v9  ;;  %v1915_v25 = vld [vmem:[#allocation5 + $0x70] sm:$0xff]  }
 0x146   :  { %1824 = vmatprep.subr.bf16.mxu1 %v1911_v0  ;;  %v1577_v63 = vcombine.low %v814_v3, %v828_v6  ;;  %v891_v10 = vrot.slane %v889_v18, 5  ;;  %v909_v3 = vshll.u32 %v2296_v45, 16  ;;  %v1115_v6 = vshrl.u32 %v1670_v52, 16 }
 0x147   :  { %v906_v60 = vor.u32 %v905_v37, %v902_v38  ;;  %v897_v38 = vrot.slane %v895_v8, 5  ;;  %v1120_v37 = vrot.slane %v1118_v24, 5  ;;  %v1918_v8 = vld [vmem:[#allocation5 + $0x98] sm:$0xff]  }
 0x148   :  { %v892_v34 = vor.u32 %v891_v10, %v888_v58  ;;  %v911_v18 = vrot.slane %v909_v3, 5  ;;  %v1117_v62 = vrot.slane %v1115_v6, 4 }
 0x149   :  { %1825 = vmatpush3.bf16.msra.mxu1 %v1911_v0  ;;  %v408_v0 = vadd.f32 %v2142_v5, %v2077_v30  ;;  %v865_v5 = vrot.slane %v864_v20, 4  ;;  %v907_v39 = vrot.slane %v906_v60, 4  ;;  %v1134_v20 = vrot.slane %v1132_v21, 5 }
 0x14a   :  { %1826 = vmatprep.subr.bf16.mxu1 %v1912_v28  ;;  %v893_v17 = vrot.slane %v892_v34, 4  ;;  %v1121_v52 = vor.u32 %v1120_v37, %v1117_v62 }
 0x14b   :  { %v466_v23 = vmax.f32 %v408_v0, 0.0  ;;  %v870_v13 = vsel %vm2090_vm4, %v865_v5, %v869_v55  ;;  %v1160_v0 = vshll.u32 %v1676_v57, 16  ;;  %v912_v41 = vsel %vm2090_vm4, %v907_v39, %v911_v18  ;;  %v1919_v39 = vld [vmem:[#allocation5 + $0x90] sm:$0xff]  }
 0x14c   :  { %1819 = vmatmul.mubr.msk.bf16.gmra.mxu1 %vm575_vm5, %v1645_v50  ;;  %v1674_v50 = vpack.c.bf16 %v2200_v61, %v2200_v61  ;;  %v1135_v61 = vor.u32 %v1134_v20, %v1131_v44  ;;  %v1300_v44 = vrot.slane %v2188_v46, 5 }
 0x14d   :  { %1827 = vmatpush3.bf16.msra.mxu1 %v1912_v28  ;;  %1830 = vmatprep.mubr.msk.bf16.mxu1 %vm575_vm5, %v1577_v63  ;;  %v884_v28 = vsel %vm2090_vm4, %v879_v1, %v883_v11  ;;  %v1673_v49 = vpack.c.bf16 %v466_v23, %v466_v23  ;;  %v1671_v63 = vpack.c.bf16 %v462_v27, %v462_v27  ;;  %v1157_v1 = vshrl.u32 %v1676_v57, 16 }
 0x14e   :  { %1828 = vmatprep.subr.bf16.mxu1 %v1913_v26  ;;  %v1579_v42 = vcombine.low %v870_v13, %v884_v28  ;;  %v474_v11 = vmax.f32 %v440_v35, 0.0  ;;  %v1143_v10 = vshrl.u32 %v1674_v50, 16  ;;  %v1146_v9 = vshll.u32 %v1674_v50, 16 }
 0x14f   :  { %v1138_v58 = vshll.u32 %v1673_v49, 16  ;;  %v1124_v5 = vshll.u32 %v1671_v63, 16  ;;  %v1159_v48 = vrot.slane %v1157_v1, 4  ;;  %v1162_v60 = vrot.slane %v1160_v0, 5  ;;  %v1921_v63 = vld [vmem:[#allocation5 + $0x80] sm:$0xff]  }
 0x150   :  { %v1677_v3 = vpack.c.bf16 %v474_v11, %v474_v11  ;;  %v1136_v15 = vrot.slane %v1135_v61, 4  ;;  %v1145_v23 = vrot.slane %v1143_v10, 4  ;;  %v1148_v28 = vrot.slane %v1146_v9, 5 }
 0x151   :  { %1829 = vmatpush3.bf16.msra.mxu1 %v1913_v26  ;;  %v424_v26 = vadd.f32 %v2162_v19, %v2077_v30  ;;  %v898_v19 = vsel %vm2090_vm4, %v893_v17, %v897_v38  ;;  %v1140_v21 = vrot.slane %v1138_v58, 5  ;;  %v1122_v27 = vrot.slane %v1121_v52, 4 }
 0x152   :  { %1838 = vmatprep.subr.bf16.mxu1 %v1914_v16  ;;  %v1580_v55 = vcombine.low %v898_v19, %v912_v41  ;;  %v1126_v34 = vrot.slane %v1124_v5, 5  ;;  %v1163_v6 = vor.u32 %v1162_v60, %v1159_v48  ;;  %v1166_v24 = vshll.u32 %v1677_v3, 16 }
 0x153   :  { %v470_v30 = vmax.f32 %v424_v26, 0.0  ;;  %v1141_v35 = vsel %vm2090_vm4, %v1136_v15, %v1140_v21  ;;  %v1149_v13 = vor.u32 %v1148_v28, %v1145_v23  ;;  %v1296_v50 = vrot.slane %v2182_v40, 5  ;;  %v1920_v26 = vld [vmem:[#allocation5 + $0x88] sm:$0xff]  }
 0x154   :  { %1831 = vmatmul.mubr.msk.bf16.vlgmr.msra.gmra.mxu1 %vm575_vm5, %v1578_v31  ;;  %v1127_v57 = vsel %vm2090_vm4, %v1122_v27, %v1126_v34  ;;  %v1164_v18 = vrot.slane %v1163_v6, 4  ;;  %v1618_v17 = vrot.slane %v2166_v22, 9  ;;  %v1316_v0 = vrot.slane %v2269_v59, 5 }
 0x155   :  { %1839 = vmatpush3.bf16.msra.mxu1 %v1914_v16  ;;  %1834 = vmatprep.mubr.msk.bf16.mxu1 %vm575_vm5, %v1579_v42  ;;  %v1917_v16 = vld [vmem:[#allocation5 + $0x60] sm:$0xff]   ;;  %v1675_v31 = vpack.c.bf16 %v470_v30, %v470_v30  ;;  %v1168_v42 = vrot.slane %v1166_v24, 5  ;;  %v1150_v20 = vrot.slane %v1149_v13, 4  ;;  %v1620_v11 = vrot.slane %v2206_v43, 9 }
 0x156   :  { %1840 = vmatprep.subr.bf16.mxu1 %v1915_v25  ;;  %v1301_v62 = vsel %vm2347_vm8, %v1618_v17, %v1300_v44  ;;  %v1622_v41 = vrot.slane %v2221_v32, 9  ;;  %v1619_v61 = vrot.slane %v2195_v51, 9  ;;  %v1621_v59 = vrot.slane %v2235_v36, 9 }
 0x157   :  { %v1169_v46 = vsel %vm2090_vm4, %v1164_v18, %v1168_v42  ;;  %v1324_v32 = vrot.slane %v2296_v45, 5  ;;  %v1320_v51 = vrot.slane %v2305_v12, 5  ;;  %v1624_v36 = vrot.slane %v2265_v7, 9 }
 0x158   :  { %v1313_v14 = vsel %vm2347_vm8, %v1621_v59, %v1312_v53  ;;  %v1623_v9 = vrot.slane %v2273_v33, 9 }
 0x159   :  { %1841 = vmatpush3.bf16.msra.mxu1 %v1915_v25  ;;  %v1152_v25 = vshll.u32 %v1675_v31, 16  ;;  %v1325_v30 = vsel %vm2347_vm8, %v1624_v36, %v1324_v32 }
 0x15a   :  { %1842 = vmatprep.subr.bf16.mxu1 %v1916_v29  ;;  %v1321_v19 = vsel %vm2347_vm8, %v1623_v9, %v1320_v51 }
 0x15b   :  { %v1154_v49 = vrot.slane %v1152_v25, 5  ;;  %v1628_v52 = vcombine.low %v1321_v19, %v1325_v30 }
 0x15c   :  { %1835 = vmatmul.mubr.msk.bf16.gmra.mxu1 %vm575_vm5, %v1580_v55 }
 0x15d   :  { %1843 = vmatpush3.bf16.msra.mxu1 %v1916_v29  ;;  %1846 = vmatprep.mubr.msk.bf16.mxu1 %vm575_vm5, %v2259_v54  ;;  %v1607_v54 = vcombine.low %v1127_v57, %v1141_v35  ;;  %v1155_v37 = vsel %vm2090_vm4, %v1150_v20, %v1154_v49  ;;  %v1308_v29 = vrot.slane %v2247_v56, 5 }
 0x15e   :  { %1844 = vmatprep.subr.bf16.mxu1 %v1917_v16  ;;  %v1608_v40 = vcombine.low %v1155_v37, %v1169_v46 }
 0x15f   :  { %v1309_v56 = vsel %vm2347_vm8, %v1620_v11, %v1308_v29 }
 0x161   :  { %1845 = vmatpush3.bf16.msra.mxu1 %v1917_v16 }
 0x162   :  { %1854 = vmatprep.subr.bf16.mxu1 %v1918_v8 }
 0x164   :  { %1847 = vmatmul.mubr.msk.bf16.vlgmr.msra.gmra.mxu1 %vm575_vm5, %v2140_v4  ;;  %v1617_v4 = vrot.slane %v2160_v47, 9  ;;  %v1304_v47 = vrot.slane %v2239_v2, 5  ;;  %v1317_v2 = vsel %vm2347_vm8, %v1622_v41, %v1316_v0 }
 0x165   :  { %1855 = vmatpush3.bf16.msra.mxu1 %v1918_v8  ;;  %1850 = vmatprep.mubr.msk.bf16.mxu1 %vm575_vm5, %v1607_v54  ;;  %v1627_v10 = vcombine.low %v1313_v14, %v1317_v2 }
 0x166   :  { %1856 = vmatprep.subr.bf16.mxu1 %v1919_v39  ;;  %v1297_v22 = vsel %vm2347_vm8, %v1617_v4, %v1296_v50  ;;  %v1305_v43 = vsel %vm2347_vm8, %v1619_v61, %v1304_v47 }
 0x167   :  { %v1625_v1 = vcombine.low %v1297_v22, %v1301_v62  ;;  %v1626_v58 = vcombine.low %v1305_v43, %v1309_v56  ;;  %v1637_v22 = vld [vmem:[%s2399_s4] ss:$0 sm:$0xff]  ;;  %s1992_s4 = smov [#allocation7]  }
 0x168   :  { %s1483_s21 = sshll.u32 %s1992_s4, 4  ;;  %s1484_s21 = int_to_ptr.vmem [resolvable:$true] %s1483_s21 }
 0x169   :  { %1857 = vmatpush3.bf16.msra.mxu1 %v1919_v39  ;;  %s1962_s22 = scalar_lea.vmem %s1484_s21, 1024  ;;  %p1967_p11 = scmp.lt.s32.totalorder %s1484_s21, %s1484_s21 }
 0x16a   :  { %1858 = vmatprep.subr.bf16.mxu1 %v1920_v26  ;;  %p1963_p10 = scmp.ne.s32.totalorder %s1484_s21, %s1962_s22  ;;  %p1968_p12 = scmp.lt.s32.totalorder %s1962_s22, %s1962_s22 }
 0x16c   :  { %1851 = vmatmul.mubr.msk.bf16.gmra.mxu1 %vm575_vm5, %v1608_v40  ;;  %p1969_p13 = por %p1968_p12, %p1967_p11 }
 0x16d   :  { %1859 = vmatpush3.bf16.msra.mxu1 %v1920_v26  ;;  %1862 = vmatprep.mubr.msk.bf16.mxu1 %vm575_vm5, %v1625_v1 }
 0x16e   :  { %1860 = vmatprep.subr.bf16.mxu1 %v1921_v63  ;;  %p1970_p0 = pnand %p1969_p13, %p1963_p10 }
 0x171   :  { %1861 = vmatpush3.bf16.msra.mxu1 %v1921_v63 }
 0x174   :  { %1863 = vmatmul.mubr.msk.bf16.vlgmr.msra.gmra.mxu1 %vm575_vm5, %v1626_v58 }
 0x175   :  { %1866 = vmatprep.mubr.msk.bf16.mxu1 %vm575_vm5, %v1627_v10 }
 0x17c   :  { %1867 = vmatmul.mubr.msk.bf16.gmra.mxu1 %vm575_vm5, %v1628_v52 }
 0x1dc   :  { %v1800_v45 = vpop.f32.mrf.mxu1 }
 0x1de   :  { %v622_v5 = vpop.f32.mrf.mxu1 }
 0x1e0   :  { %v1801_v55 = vpop.f32.mrf.mxu1 }
 0x1e2   :  { %v625_v16 = vpop.f32.mrf.mxu1 }
 0x1fc   :  { %v1804_v12 = vpop.f32.mrf.mxu1 }
 0x1fe   :  { %v638_v48 = vpop.f32.mrf.mxu1 }
 0x200   :  { %v1805_v7 = vpop.f32.mrf.mxu1 }
 0x202   :  { %v641_v60 = vpop.f32.mrf.mxu1 }
 0x204   :  { %v1816_v3 = vpop.f32.mrf.mxu1 }
 0x205   :  { %v752_v49 = vadd.f32 %v1816_v3, %v1800_v45 }
 0x206   :  { %v743_v15 = vpop.f32.mrf.mxu1 }
 0x207   :  { %v744_v17 = vadd.f32 %v743_v15, %v622_v5 }
 0x208   :  { %v1817_v33 = vpop.f32.mrf.mxu1 }
 0x209   :  { %v755_v46 = vadd.f32 %v1817_v33, %v1801_v55 }
 0x20a   :  { %v746_v21 = vpop.f32.mrf.mxu1 }
 0x20b   :  { %v747_v40 = vadd.f32 %v746_v21, %v625_v16 }
 0x20c   :  { %v1820_v23 = vpop.f32.mrf.mxu1 }
 0x20d   :  { %v768_v0 = vadd.f32 %v1820_v23, %v1804_v12 }
 0x20e   :  { %v759_v28 = vpop.f32.mrf.mxu1 }
 0x20f   :  { %v760_v56 = vadd.f32 %v759_v28, %v638_v48 }
 0x210   :  { %v1821_v31 = vpop.f32.mrf.mxu1 }
 0x211   :  { %v771_v10 = vadd.f32 %v1821_v31, %v1805_v7 }
 0x212   :  { %v762_v27 = vpop.f32.mrf.mxu1 }
 0x213   :  { %v763_v45 = vadd.f32 %v762_v27, %v641_v60 }
 0x214   :  { %v1832_v34 = vpop.f32.mrf.mxu1 }
 0x215   :  { %v1028_v26 = vadd.f32 %v1832_v34, %v752_v49 }
 0x216   :  { %v995_v8 = vpop.f32.mrf.mxu1 }
 0x217   :  { %v1026_v4 = vadd.f32 %v995_v8, %v744_v17 }
 0x218   :  { %v1833_v6 = vpop.f32.mrf.mxu1 }
 0x219   :  { %v1029_v63 = vadd.f32 %v1833_v6, %v755_v46 }
 0x21a   :  { %v998_v24 = vpop.f32.mrf.mxu1 }
 0x21b   :  { %v1027_v11 = vadd.f32 %v998_v24, %v747_v40 }
 0x21c   :  { %v1836_v35 = vpop.f32.mrf.mxu1 }
 0x21d   :  { %v1032_v59 = vadd.f32 %v1836_v35, %v768_v0 }
 0x21e   :  { %v1011_v13 = vpop.f32.mrf.mxu1 }
 0x21f   :  { %v1030_v51 = vadd.f32 %v1011_v13, %v760_v56 }
 0x220   :  { %v1837_v25 = vpop.f32.mrf.mxu1 }
 0x221   :  { %v1033_v5 = vadd.f32 %v1837_v25, %v771_v10 }
 0x222   :  { %v1014_v57 = vpop.f32.mrf.mxu1 }
 0x223   :  { %v1031_v15 = vadd.f32 %v1014_v57, %v763_v45 }
 0x224   :  { %v1848_v39 = vpop.f32.mrf.mxu1 }
 0x225   :  { %v1285_v62 = vadd.f32 %v1848_v39, %v1028_v26 }
 0x226   :  { %v1252_v18 = vpop.f32.mrf.mxu1 }
 0x227   :  { %v1283_v29 = vadd.f32 %v1252_v18, %v1026_v4 }
 0x228   :  { %v1849_v42 = vpop.f32.mrf.mxu1 }
 0x229   :  { %v1286_v53 = vadd.f32 %v1849_v42, %v1029_v63 }
 0x22a   :  { %v1255_v54 = vpop.f32.mrf.mxu1 }
 0x22b   :  { %v1284_v43 = vadd.f32 %v1255_v54, %v1027_v11 }
 0x22c   :  { %v1852_v44 = vpop.f32.mrf.mxu1 }
 0x22d   :  { %v1289_v9 = vadd.f32 %v1852_v44, %v1032_v59 }
 0x22e   :  { %v1268_v20 = vpop.f32.mrf.mxu1 }
 0x22f   :  { %v1287_v16 = vadd.f32 %v1268_v20, %v1030_v51 }
 0x230   :  { %v1853_v50 = vpop.f32.mrf.mxu1 }
 0x231   :  { %v1290_v21 = vadd.f32 %v1853_v50, %v1033_v5 }
 0x232   :  { %v1271_v38 = vpop.f32.mrf.mxu1 }
 0x233   :  { %v1288_v34 = vadd.f32 %v1271_v38, %v1031_v15 }
 0x234   :  { %v1864_v37 = vpop.f32.mrf.mxu1 }
 0x235   :  { %v1441_v1 = vadd.f32 %v1864_v37, %v1285_v62 }
 0x236   :  { %v1408_v47 = vpop.f32.mrf.mxu1 }
 0x237   :  { %v1456_v41 = vadd.f32 %v1637_v22, %v1441_v1  ;;  %v1439_v61 = vadd.f32 %v1408_v47, %v1283_v29 }
 0x238   :  { %v1865_v2 = vpop.f32.mrf.mxu1 }
 0x239   :  { %v1464_v58 = vmax.f32 %v1456_v41, 0.0  ;;  %v1454_v14 = vadd.f32 %v1637_v22, %v1439_v61  ;;  %v1442_v32 = vadd.f32 %v1865_v2, %v1286_v53 }
 0x23a   :  { %v1411_v36 = vpop.f32.mrf.mxu1 }
 0x23b   :  { %1472 = vst [vmem:[#allocation7 + $0x10] sm:$0xff] %v1464_v58  ;;  %v1462_v30 = vmax.f32 %v1454_v14, 0.0  ;;  %v1457_v19 = vadd.f32 %v1637_v22, %v1442_v32  ;;  %v1440_v52 = vadd.f32 %v1411_v36, %v1284_v43 }
 0x23c   :  { %v1868_v55 = vpop.f32.mrf.mxu1 }
 0x23d   :  { %1470 = vst [vmem:[#allocation7] sm:$0xff] %v1462_v30  ;;  %v1465_v12 = vmax.f32 %v1457_v19, 0.0  ;;  %v1455_v48 = vadd.f32 %v1637_v22, %v1440_v52  ;;  %v1445_v3 = vadd.f32 %v1868_v55, %v1289_v9 }
 0x23e   :  { %v1424_v33 = vpop.f32.mrf.mxu1 }
 0x23f   :  { %1473 = vst [vmem:[#allocation7 + $0x18] sm:$0xff] %v1465_v12  ;;  %v1463_v7 = vmax.f32 %v1455_v48, 0.0  ;;  %v1460_v23 = vadd.f32 %v1637_v22, %v1445_v3  ;;  %v1443_v28 = vadd.f32 %v1424_v33, %v1287_v16 }
 0x240   :  { %v1869_v31 = vpop.f32.mrf.mxu1 }
 0x241   :  { %1471 = vst [vmem:[#allocation7 + $0x8] sm:$0xff] %v1463_v7  ;;  %v1468_v8 = vmax.f32 %v1460_v23, 0.0  ;;  %v1458_v6 = vadd.f32 %v1637_v22, %v1443_v28  ;;  %v1446_v60 = vadd.f32 %v1869_v31, %v1290_v21 }
 0x242   :  { %v1427_v27 = vpop.f32.mrf.mxu1 }
 0x243   :  { %1476 = vst [vmem:[#allocation7 + $0x30] sm:$0xff] %v1468_v8  ;;  %v1466_v24 = vmax.f32 %v1458_v6, 0.0  ;;  %v1461_v35 = vadd.f32 %v1637_v22, %v1446_v60  ;;  %v1444_v13 = vadd.f32 %v1427_v27, %v1288_v34 }
 0x245   :  { %1474 = vst [vmem:[#allocation7 + $0x20] sm:$0xff] %v1466_v24  ;;  %v1469_v25 = vmax.f32 %v1461_v35, 0.0  ;;  %v1459_v57 = vadd.f32 %v1637_v22, %v1444_v13 }
 0x247   :  { %1477 = vst [vmem:[#allocation7 + $0x38] sm:$0xff] %v1469_v25  ;;  %v1467_v39 = vmax.f32 %v1459_v57, 0.0 }
 0x249   :  { %1475 = vst [vmem:[#allocation7 + $0x28] sm:$0xff] %v1467_v39 }
 0x24a   :  { %1973 = shalt.err (!%p1970_p0)
}
 0x24b   :  { %s1993_s23 = smov 128   ;;  %s1994_s24 = smov 8  }
 0x24c   :  { %1489 = dma.vmem_to_hbm [thread:$0]  %s1484_s21, 1024, %s2400_s5, [#allocation4], %s1993_s23, %s1993_s23, %s1994_s24  }
 0x24d   :  { %1986 = dma.done.wait [#allocation4], 1024  }
 0x24e   :  { %1987 = vsyncadd [#allocation4], 4294966272 }
 0x24f   :  { %1493 = vsyncpa [#allocation3], 1 }
 0x250   :  { %1494 = vsyncpa [#allocation6], 1 }
 0x251   :  { %1495 = vsyncpa [#allocation4], 1 }

</bundles_post_ra>
